<compile_context>
chip_gen: v6e
topology: v6e:2x2x1
jax: 0.10.0
libtpu: 0.0.40
codegen_flags: <defaults>
</compile_context>

<pallas_src>
import jax
import jax.numpy as jnp
from jax.experimental import pallas as pl
from jax.experimental.pallas import tpu as pltpu


def _round_up(v, m):
    return ((v + m - 1) // m) * m


def _gru_actor_kernel(x_ref, mask_ref, h0_ref,
                      w_g_ref, b_g_ref, w_out_ref, b_out_ref,
                      logits_ref, h_out_ref, xh_ref):
    """One timestep of masked GRU + categorical head; grid axis 0 = time."""
    Hp = h0_ref.shape[1]
    OBSp = x_ref.shape[1]
    t = pl.program_id(0)

    # h_out_ref is a VMEM-resident output block (same block index for every t):
    # it doubles as the carried hidden state across the rollout.
    @pl.when(t == 0)
    def _():
        h_out_ref[...] = h0_ref[...]

    h_prev = h_out_ref[...] * mask_ref[...]        # [Bp, Hp] * [Bp, 1] episode reset

    # Stage [x_t | h_masked] into one lane-aligned slab for a single MXU pass.
    xh_ref[:, :OBSp] = x_ref[...]
    xh_ref[:, OBSp:] = h_prev

    # Packed gate weights: cols [0:Hp)=r (input+hidden summed), [Hp:2Hp)=z
    # (summed), [2Hp:3Hp)=n input part, [3Hp:4Hp)=n hidden part.
    g = jnp.dot(xh_ref[...], w_g_ref[...],
                preferred_element_type=jnp.float32) + b_g_ref[...]

    r = jax.nn.sigmoid(g[:, 0 * Hp:1 * Hp])
    z = jax.nn.sigmoid(g[:, 1 * Hp:2 * Hp])
    n = jnp.tanh(g[:, 2 * Hp:3 * Hp] + r * g[:, 3 * Hp:4 * Hp])
    h_new = (1.0 - z) * n + z * h_prev             # [Bp, Hp]

    logits = jnp.dot(h_new, w_out_ref[...],
                     preferred_element_type=jnp.float32) + b_out_ref[...]

    logits_ref[...] = logits.astype(logits_ref.dtype)
    h_out_ref[...] = h_new.astype(h_out_ref.dtype)


def pack_params(params, obs_dim, hidden, num_actions):
    """Zero-pads lane dims to 128 and packs GRU gate weights for one MXU pass."""
    OBSp = _round_up(max(obs_dim, 1), 128)
    Hp = _round_up(max(hidden, 1), 128)
    Ap = _round_up(max(num_actions, 1), 128)
    K = OBSp + Hp
    H, A = hidden, num_actions

    w_ih = params["w_ih"]          # [OBS, 3H], gate order (r, z, n)
    w_hh = params["w_hh"]          # [H,   3H]
    b_ih = params["b_ih"].reshape(-1)
    b_hh = params["b_hh"].reshape(-1)

    w_g = jnp.zeros((K, 4 * Hp), jnp.float32)
    # r gate (input + hidden contributions summed by the fused dot)
    w_g = w_g.at[:obs_dim, 0:H].set(w_ih[:, 0:H])
    w_g = w_g.at[OBSp:OBSp + H, 0:H].set(w_hh[:, 0:H])
    # z gate
    w_g = w_g.at[:obs_dim, Hp:Hp + H].set(w_ih[:, H:2 * H])
    w_g = w_g.at[OBSp:OBSp + H, Hp:Hp + H].set(w_hh[:, H:2 * H])
    # n gate — input part and hidden part kept separate (hidden part gets * r)
    w_g = w_g.at[:obs_dim, 2 * Hp:2 * Hp + H].set(w_ih[:, 2 * H:3 * H])
    w_g = w_g.at[OBSp:OBSp + H, 3 * Hp:3 * Hp + H].set(w_hh[:, 2 * H:3 * H])

    b_g = jnp.zeros((1, 4 * Hp), jnp.float32)
    b_g = b_g.at[0, 0:H].set(b_ih[0:H] + b_hh[0:H])
    b_g = b_g.at[0, Hp:Hp + H].set(b_ih[H:2 * H] + b_hh[H:2 * H])
    b_g = b_g.at[0, 2 * Hp:2 * Hp + H].set(b_ih[2 * H:3 * H])
    b_g = b_g.at[0, 3 * Hp:3 * Hp + H].set(b_hh[2 * H:3 * H])

    w_out = jnp.zeros((Hp, Ap), jnp.float32).at[:H, :A].set(params["w_out"])
    b_out = jnp.zeros((1, Ap), jnp.float32).at[0, :A].set(params["b_out"].reshape(-1))

    return {"w_g": w_g, "b_g": b_g, "w_out": w_out, "b_out": b_out,
            "OBSp": OBSp, "Hp": Hp, "Ap": Ap, "OBS": obs_dim, "H": H, "A": A}


def actor_forward(x_seq, recurrent_states, recurrent_masks, packed):
    """Fused T-step masked-GRU rollout + categorical head.

    x_seq:            [T, B, OBS]
    recurrent_states: [B, H]     (initial hidden state)
    recurrent_masks:  [T, B, 1]  (0/1 episode-reset masks)
    Returns (logits [T, B, A], final recurrent_states [B, H]).
    """
    T, B, OBS = x_seq.shape
    H = recurrent_states.shape[1]
    OBSp, Hp, Ap = packed["OBSp"], packed["Hp"], packed["Ap"]
    A = packed["A"]
    Bp = _round_up(B, 8)
    K = OBSp + Hp

    xp = jnp.zeros((T, Bp, OBSp), jnp.float32).at[:, :B, :OBS].set(x_seq)
    hp = jnp.zeros((Bp, Hp), jnp.float32).at[:B, :H].set(recurrent_states)
    mp = jnp.zeros((T, Bp, 1), jnp.float32).at[:, :B, :].set(recurrent_masks)

    logits_p, h_final_p = pl.pallas_call(
        _gru_actor_kernel,
        out_shape=(
            jax.ShapeDtypeStruct((T, Bp, Ap), jnp.float32),
            jax.ShapeDtypeStruct((Bp, Hp), jnp.float32),
        ),
        grid=(T,),
        in_specs=[
            pl.BlockSpec((None, Bp, OBSp), lambda t: (t, 0, 0)),   # x_t (per step)
            pl.BlockSpec((None, Bp, 1), lambda t: (t, 0, 0)),      # mask_t
            pl.BlockSpec((Bp, Hp), lambda t: (0, 0)),              # h0 (resident)
            pl.BlockSpec((K, 4 * Hp), lambda t: (0, 0)),           # packed gate W (resident)
            pl.BlockSpec((1, 4 * Hp), lambda t: (0, 0)),           # packed gate b (resident)
            pl.BlockSpec((Hp, Ap), lambda t: (0, 0)),              # head W (resident)
            pl.BlockSpec((1, Ap), lambda t: (0, 0)),               # head b (resident)
        ],
        out_specs=(
            pl.BlockSpec((None, Bp, Ap), lambda t: (t, 0, 0)),     # logits per step
            pl.BlockSpec((Bp, Hp), lambda t: (0, 0)),              # carried / final h
        ),
        scratch_shapes=[pltpu.VMEM((Bp, K), jnp.float32)],         # [x | h] staging slab
        compiler_params=pltpu.CompilerParams(
            dimension_semantics=("arbitrary",)),
    )(xp, mp, hp, packed["w_g"], packed["b_g"], packed["w_out"], packed["b_out"])

    logits = logits_p[:, :B, :A]
    h_final = h_final_p[:B, :H]
    return logits, h_final


def init_params(key, obs_dim, hidden, num_actions):
    k1, k2, k3 = jax.random.split(key, 3)
    scale = 0.1
    return {
        "w_ih": scale * jax.random.normal(k1, (obs_dim, 3 * hidden), jnp.float32),
        "b_ih": jnp.zeros((3 * hidden,), jnp.float32),
        "w_hh": scale * jax.random.normal(k2, (hidden, 3 * hidden), jnp.float32),
        "b_hh": jnp.zeros((3 * hidden,), jnp.float32),
        "w_out": scale * jax.random.normal(k3, (hidden, num_actions), jnp.float32),
        "b_out": jnp.zeros((num_actions,), jnp.float32),
    }


def reference_forward(x_seq, h0, masks_seq, params):
    """Pure-JAX masked-GRU + head rollout (PyTorch nn.GRUCell semantics)."""
    H = h0.shape[1]

    def step(h, inputs):
        x_t, m_t = inputs
        h_m = h * m_t
        gi = x_t @ params["w_ih"] + params["b_ih"]
        gh = h_m @ params["w_hh"] + params["b_hh"]
        r = jax.nn.sigmoid(gi[:, :H] + gh[:, :H])
        z = jax.nn.sigmoid(gi[:, H:2 * H] + gh[:, H:2 * H])
        n = jnp.tanh(gi[:, 2 * H:] + r * gh[:, 2 * H:])
        h_new = (1.0 - z) * n + z * h_m
        logits = h_new @ params["w_out"] + params["b_out"]
        return h_new, logits

    h_final, logits = jax.lax.scan(step, h0, (x_seq, masks_seq))
    return logits, h_final


if __name__ == "__main__":
    T, B, OBS, H, A = 6, 8, 16, 32, 4

    key = jax.random.PRNGKey(0)
    k_x, k_h, k_m, k_p = jax.random.split(key, 4)

    x_seq = jax.random.normal(k_x, (T, B, OBS), jnp.float32)
    recurrent_states = jax.random.normal(k_h, (B, H), jnp.float32)
    # Random 0/1 episode-reset masks to exercise the masking path.
    recurrent_masks = (jax.random.uniform(k_m, (T, B, 1)) > 0.25).astype(jnp.float32)

    params = init_params(k_p, OBS, H, A)
    packed = pack_params(params, OBS, H, A)

    logits, new_states = actor_forward(x_seq, recurrent_states, recurrent_masks, packed)
    jax.block_until_ready((logits, new_states))

    logits_ref, h_ref = reference_forward(x_seq, recurrent_states, recurrent_masks, params)

    assert jnp.allclose(logits, logits_ref, atol=1e-4), "logits mismatch"
    assert jnp.allclose(new_states, h_ref, atol=1e-4), "state mismatch"

    print("KERNEL_OK")
</pallas_src>

<mosaic_0001>
module attributes {stable_mosaic.version = 11 : i64} {
  func.func @_gru_actor_kernel(%arg0: i32, %arg1: memref<1x8x128xf32, #tpu.memory_space<vmem>>, %arg2: memref<1x8x1xf32, #tpu.memory_space<vmem>>, %arg3: memref<8x128xf32, #tpu.memory_space<vmem>>, %arg4: memref<256x512xf32, #tpu.memory_space<vmem>>, %arg5: memref<1x512xf32, #tpu.memory_space<vmem>>, %arg6: memref<128x128xf32, #tpu.memory_space<vmem>>, %arg7: memref<1x128xf32, #tpu.memory_space<vmem>>, %arg8: memref<1x8x128xf32, #tpu.memory_space<vmem>>, %arg9: memref<8x128xf32, #tpu.memory_space<vmem>>, %arg10: memref<8x256xf32, #tpu.memory_space<vmem>>) attributes {dimension_semantics = [#tpu.dimension_semantics<arbitrary>], iteration_bounds = array<i64: 6>, scalar_prefetch = 0 : i64, scratch_operands = 1 : i64, tpu.core_type = #tpu.core_type<tc>, window_params = [{transform_indices = @transform_0, window_bounds = array<i64: 1, 8, 128>}, {transform_indices = @transform_1, window_bounds = array<i64: 1, 8, 1>}, {pipeline_mode = #tpu.pipeline_mode<synchronous>, transform_indices = @transform_2, window_bounds = array<i64: 8, 128>}, {pipeline_mode = #tpu.pipeline_mode<synchronous>, transform_indices = @transform_3, window_bounds = array<i64: 256, 512>}, {pipeline_mode = #tpu.pipeline_mode<synchronous>, transform_indices = @transform_4, window_bounds = array<i64: 1, 512>}, {pipeline_mode = #tpu.pipeline_mode<synchronous>, transform_indices = @transform_5, window_bounds = array<i64: 128, 128>}, {pipeline_mode = #tpu.pipeline_mode<synchronous>, transform_indices = @transform_6, window_bounds = array<i64: 1, 128>}, {transform_indices = @transform_7, window_bounds = array<i64: 1, 8, 128>}, {pipeline_mode = #tpu.pipeline_mode<synchronous>, transform_indices = @transform_8, window_bounds = array<i64: 8, 128>}]} {
    %c0_i32 = arith.constant 0 : i32
    %0 = arith.cmpi eq, %arg0, %c0_i32 : i32
    %1 = arith.extui %0 : i1 to i32
    %c0_i32_0 = arith.constant 0 : i32
    %2 = arith.cmpi ne, %1, %c0_i32_0 : i32
    scf.if %2 {
      %c0_30 = arith.constant 0 : index
      %c0_31 = arith.constant 0 : index
      %49 = vector.load %arg3[%c0_30, %c0_31] : memref<8x128xf32, #tpu.memory_space<vmem>>, vector<8x128xf32>
      %c0_32 = arith.constant 0 : index
      %c0_33 = arith.constant 0 : index
      %50 = vector.load %arg9[%c0_32, %c0_33] : memref<8x128xf32, #tpu.memory_space<vmem>>, vector<8x128xf32>
      tpu.vector_store %arg9[%c0_32, %c0_33], %49 {strides = array<i32>} : memref<8x128xf32, #tpu.memory_space<vmem>>, vector<8x128xf32>,
    } else {
    }
    %c0 = arith.constant 0 : index
    %c0_1 = arith.constant 0 : index
    %3 = vector.load %arg9[%c0, %c0_1] : memref<8x128xf32, #tpu.memory_space<vmem>>, vector<8x128xf32>
    %c0_2 = arith.constant 0 : index
    %c0_3 = arith.constant 0 : index
    %c0_4 = arith.constant 0 : index
    %4 = vector.load %arg2[%c0_2, %c0_3, %c0_4] : memref<1x8x1xf32, #tpu.memory_space<vmem>>, vector<1x8x1xf32>
    %5 = vector.shape_cast %4 : vector<1x8x1xf32> to vector<8x1xf32>
    %6 = vector.broadcast %5 : vector<8x1xf32> to vector<8x128xf32>
    %7 = arith.mulf %3, %6 : vector<8x128xf32>
    %c0_5 = arith.constant 0 : index
    %c0_6 = arith.constant 0 : index
    %c0_7 = arith.constant 0 : index
    %8 = vector.load %arg1[%c0_5, %c0_6, %c0_7] : memref<1x8x128xf32, #tpu.memory_space<vmem>>, vector<1x8x128xf32>
    %9 = vector.shape_cast %8 : vector<1x8x128xf32> to vector<8x128xf32>
    %c0_8 = arith.constant 0 : index
    %c0_9 = arith.constant 0 : index
    %10 = vector.load %arg10[%c0_8, %c0_9] : memref<8x256xf32, #tpu.memory_space<vmem>>, vector<8x128xf32>
    tpu.vector_store %arg10[%c0_8, %c0_9], %9 {strides = array<i32>} : memref<8x256xf32, #tpu.memory_space<vmem>>, vector<8x128xf32>,
    %c0_10 = arith.constant 0 : index
    %c128 = arith.constant 128 : index
    %11 = vector.load %arg10[%c0_10, %c128] : memref<8x256xf32, #tpu.memory_space<vmem>>, vector<8x128xf32>
    tpu.vector_store %arg10[%c0_10, %c128], %7 {strides = array<i32>} : memref<8x256xf32, #tpu.memory_space<vmem>>, vector<8x128xf32>,
    %c0_11 = arith.constant 0 : index
    %c0_12 = arith.constant 0 : index
    %12 = vector.load %arg10[%c0_11, %c0_12] : memref<8x256xf32, #tpu.memory_space<vmem>>, vector<8x256xf32>
    %c0_13 = arith.constant 0 : index
    %c0_14 = arith.constant 0 : index
    %13 = vector.load %arg4[%c0_13, %c0_14] : memref<256x512xf32, #tpu.memory_space<vmem>>, vector<256x512xf32>
    %cst = arith.constant dense<0.000000e+00> : vector<8x512xf32>
    %14 = tpu.matmul %12, %13, %cst {dimension_numbers = #tpu.dot_dimension_numbers<[1], [0], [0], [1], [0, 0, 1, 1], [], []>} : vector<8x256xf32>, vector<256x512xf32>, vector<8x512xf32> -> vector<8x512xf32>
    %c0_15 = arith.constant 0 : index
    %c0_16 = arith.constant 0 : index
    %15 = vector.load %arg5[%c0_15, %c0_16] : memref<1x512xf32, #tpu.memory_space<vmem>>, vector<1x512xf32>
    %16 = vector.broadcast %15 : vector<1x512xf32> to vector<8x512xf32>
    %17 = arith.addf %14, %16 : vector<8x512xf32>
    %18 = vector.extract_strided_slice %17 {offsets = [0, 0], sizes = [8, 128], strides = [1, 1]} : vector<8x512xf32> to vector<8x128xf32>
    %19 = arith.negf %18 : vector<8x128xf32>
    %20 = math.exp %19 : vector<8x128xf32>
    %cst_17 = arith.constant 1.000000e+00 : f32
    %21 = vector.broadcast %cst_17 : f32 to vector<8x128xf32>
    %22 = arith.addf %21, %20 : vector<8x128xf32>
    %23 = arith.divf %21, %22 : vector<8x128xf32>
    %24 = vector.extract_strided_slice %17 {offsets = [0, 128], sizes = [8, 128], strides = [1, 1]} : vector<8x512xf32> to vector<8x128xf32>
    %25 = arith.negf %24 : vector<8x128xf32>
    %26 = math.exp %25 : vector<8x128xf32>
    %cst_18 = arith.constant 1.000000e+00 : f32
    %27 = vector.broadcast %cst_18 : f32 to vector<8x128xf32>
    %28 = arith.addf %27, %26 : vector<8x128xf32>
    %29 = arith.divf %27, %28 : vector<8x128xf32>
    %30 = vector.extract_strided_slice %17 {offsets = [0, 256], sizes = [8, 128], strides = [1, 1]} : vector<8x512xf32> to vector<8x128xf32>
    %31 = vector.extract_strided_slice %17 {offsets = [0, 384], sizes = [8, 128], strides = [1, 1]} : vector<8x512xf32> to vector<8x128xf32>
    %32 = arith.mulf %23, %31 : vector<8x128xf32>
    %33 = arith.addf %30, %32 : vector<8x128xf32>
    %34 = math.tanh %33 : vector<8x128xf32>
    %cst_19 = arith.constant 1.000000e+00 : f32
    %35 = vector.broadcast %cst_19 : f32 to vector<8x128xf32>
    %36 = arith.subf %35, %29 : vector<8x128xf32>
    %37 = arith.mulf %36, %34 : vector<8x128xf32>
    %38 = arith.mulf %29, %7 : vector<8x128xf32>
    %39 = arith.addf %37, %38 : vector<8x128xf32>
    %c0_20 = arith.constant 0 : index
    %c0_21 = arith.constant 0 : index
    %40 = vector.load %arg6[%c0_20, %c0_21] : memref<128x128xf32, #tpu.memory_space<vmem>>, vector<128x128xf32>
    %cst_22 = arith.constant dense<0.000000e+00> : vector<8x128xf32>
    %41 = tpu.matmul %39, %40, %cst_22 {dimension_numbers = #tpu.dot_dimension_numbers<[1], [0], [0], [1], [0, 0, 1, 1], [], []>} : vector<8x128xf32>, vector<128x128xf32>, vector<8x128xf32> -> vector<8x128xf32>
    %c0_23 = arith.constant 0 : index
    %c0_24 = arith.constant 0 : index
    %42 = vector.load %arg7[%c0_23, %c0_24] : memref<1x128xf32, #tpu.memory_space<vmem>>, vector<1x128xf32>
    %43 = vector.broadcast %42 : vector<1x128xf32> to vector<8x128xf32>
    %44 = arith.addf %41, %43 : vector<8x128xf32>
    %c0_25 = arith.constant 0 : index
    %c0_26 = arith.constant 0 : index
    %c0_27 = arith.constant 0 : index
    %45 = vector.load %arg8[%c0_25, %c0_26, %c0_27] : memref<1x8x128xf32, #tpu.memory_space<vmem>>, vector<1x8x128xf32>
    %46 = vector.shape_cast %45 : vector<1x8x128xf32> to vector<8x128xf32>
    %47 = vector.shape_cast %44 : vector<8x128xf32> to vector<1x8x128xf32>
    tpu.vector_store %arg8[%c0_25, %c0_26, %c0_27], %47 {strides = array<i32>} : memref<1x8x128xf32, #tpu.memory_space<vmem>>, vector<1x8x128xf32>,
    %c0_28 = arith.constant 0 : index
    %c0_29 = arith.constant 0 : index
    %48 = vector.load %arg9[%c0_28, %c0_29] : memref<8x128xf32, #tpu.memory_space<vmem>>, vector<8x128xf32>
    tpu.vector_store %arg9[%c0_28, %c0_29], %39 {strides = array<i32>} : memref<8x128xf32, #tpu.memory_space<vmem>>, vector<8x128xf32>,
    return
  }
  func.func @transform_0(%arg0: i32) -> (i32, i32, i32) {
    %c0_i32 = arith.constant 0 : i32
    %c0_i32_0 = arith.constant 0 : i32
    %c0_i32_1 = arith.constant 0 : i32
    return %arg0, %c0_i32, %c0_i32_0 : i32, i32, i32
  }
  func.func @transform_1(%arg0: i32) -> (i32, i32, i32) {
    %c0_i32 = arith.constant 0 : i32
    %c0_i32_0 = arith.constant 0 : i32
    %c0_i32_1 = arith.constant 0 : i32
    return %arg0, %c0_i32, %c0_i32_0 : i32, i32, i32
  }
  func.func @transform_2(%arg0: i32) -> (i32, i32) {
    %c0_i32 = arith.constant 0 : i32
    %c0_i32_0 = arith.constant 0 : i32
    %c0_i32_1 = arith.constant 0 : i32
    return %c0_i32, %c0_i32_0 : i32, i32
  }
  func.func @transform_3(%arg0: i32) -> (i32, i32) {
    %c0_i32 = arith.constant 0 : i32
    %c0_i32_0 = arith.constant 0 : i32
    %c0_i32_1 = arith.constant 0 : i32
    return %c0_i32, %c0_i32_0 : i32, i32
  }
  func.func @transform_4(%arg0: i32) -> (i32, i32) {
    %c0_i32 = arith.constant 0 : i32
    %c0_i32_0 = arith.constant 0 : i32
    %c0_i32_1 = arith.constant 0 : i32
    return %c0_i32, %c0_i32_0 : i32, i32
  }
  func.func @transform_5(%arg0: i32) -> (i32, i32) {
    %c0_i32 = arith.constant 0 : i32
    %c0_i32_0 = arith.constant 0 : i32
    %c0_i32_1 = arith.constant 0 : i32
    return %c0_i32, %c0_i32_0 : i32, i32
  }
  func.func @transform_6(%arg0: i32) -> (i32, i32) {
    %c0_i32 = arith.constant 0 : i32
    %c0_i32_0 = arith.constant 0 : i32
    %c0_i32_1 = arith.constant 0 : i32
    return %c0_i32, %c0_i32_0 : i32, i32
  }
  func.func @transform_7(%arg0: i32) -> (i32, i32, i32) {
    %c0_i32 = arith.constant 0 : i32
    %c0_i32_0 = arith.constant 0 : i32
    %c0_i32_1 = arith.constant 0 : i32
    return %arg0, %c0_i32, %c0_i32_0 : i32, i32, i32
  }
  func.func @transform_8(%arg0: i32) -> (i32, i32) {
    %c0_i32 = arith.constant 0 : i32
    %c0_i32_0 = arith.constant 0 : i32
    %c0_i32_1 = arith.constant 0 : i32
    return %c0_i32, %c0_i32_0 : i32, i32
  }
}

</mosaic_0001>

<bundles_post_ra>
// kernel: tpu_custom_call.1
= control target key start
LH: loop header
LB: loop body
LE: loop exit
PB: predicated region body
PF: predicated region fallthrough
CT: control target
= control target key end

     0   :  { %14 = vsyncpa [#allocation4], 0  ;;  %s1446_s0 = inlined_call_operand.vmem [shape: f32[6,8,128], index: 0, kind: input, shape index: {}]   ;;  %s1447_s1 = inlined_call_operand.vmem [shape: f32[6,8,1], index: 1, kind: input, shape index: {}]   ;;  %s1448_s2 = inlined_call_operand.vmem [shape: f32[8,128], index: 2, kind: input, shape index: {}]   ;;  %s1449_s3 = inlined_call_operand.hbm [shape: f32[256,512], index: 3, kind: input, shape index: {}]   ;;  %s1450_s4 = inlined_call_operand.vmem [shape: f32[1,512], index: 4, kind: input, shape index: {}]   ;;  %s1451_s5 = inlined_call_operand.hbm [shape: f32[128,128], index: 5, kind: input, shape index: {}]   ;;  %s1452_s6 = inlined_call_operand.vmem [shape: f32[1,128], index: 6, kind: input, shape index: {}]   ;;  %s1453_s7 = inlined_call_operand.hbm [shape: f32[6,8,128], index: 7, kind: output, shape index: {0}]   ;;  %s1454_s8 = inlined_call_operand.hbm [shape: f32[8,128], index: 8, kind: output, shape index: {1}]  }
   0x1   :  { %15 = vsyncpa [#allocation7], 0 }
   0x2   :  { %16 = vsyncpa [#allocation5], 0 }
   0x3   :  { %18 = vsyncpa [#allocation5 + $0x1], 0 }
   0x4   :  { %19 = vsyncpa [#allocation10], 0  ;;  %s1265_s27 = smov 0   ;;  %s1267_s28 = smov 0  }
   0x5   :  { %s1269_s29 = smov 0   ;;  %s1271_s30 = smov 0  }
   0x6 LB: > { %s1286_s9 = sadd.s32 4294967295, %s1207_s30   ;;  %s901_s10 = sadd.s32 4294967294, %s1207_s30   ;;  %s1207_s30 = sphi %s1271_s30, %s1474_s30   ;;  %s1203_s29 = sphi %s1269_s29, %s1473_s29   ;;  %s1199_s28 = sphi %s1267_s28, %s1472_s28   ;;  %s1195_s27 = sphi %s1265_s27, %s1471_s27  }
   0x7   : > { %s1290_s11 = sadd.s32 1, %s1207_s30   ;;  %s189_s12 = sadd.s32 1, %s1203_s29 }
   0x8   : > { %s186_s13 = ssub.s32 %s1207_s30, %s1290_s11  ;;  %p199_p0 = scmp.ne.s32.totalorder %s1203_s29, %s1199_s28 }
   0x9   : > { %p187_p1 = scmp.eq.s32.totalorder %s186_s13, 0  ;;  %p1455_p2 = scmp.eq.s32.totalorder %s1286_s9, 5 }
   0xa   : > { %p205_p3 = scmp.ne.s32.totalorder %s1199_s28, %s1195_s27  ;;  %p206_p4 = scmp.eq.s32.totalorder %s901_s10, 5 }
   0xb   : > { %s1301_s14 = scalar_select %p187_p1, %s1203_s29, %s189_s12  }
   0xc   : > { %p1305_p5 = por %p1455_p2, %p199_p0  ;;  %p1309_p6 = por %p206_p4, %p205_p3 }
   0xd   : > { %p902_p7 = scmp.ge.s32.totalorder %s1207_s30, 1  ;;  %p234_p8 = scmp.lt.s32.totalorder %s1207_s30, 7 }
   0xe   : > { %s1458_s16 = scalar_select %p1309_p6, 1, 0 }
   0xf   : > { %p1456_p10 = scmp.eq.s32.totalorder %s1286_s9, 0  ;;  %p1317_p11 = pnand %p902_p7, %p234_p8 }
  0x10   : > { %s1209_s18 = smov [#allocation3]   ;;  %s1210_s21 = smov [#allocation6]  }
  0x11   : > { %s249_s19 = sshll.u32 %s1209_s18, 4  ;;  %p988_p12 = pneg %p1317_p11  ;;  %s250_s19 = int_to_ptr.vmem [resolvable:$true] %s249_s19 }
  0x12   : > { %s265_s22 = sshll.u32 %s1210_s21, 4  ;;  %s1070_s23 = scalar_lea.vmem %s250_s19, 16384  ;;  %s266_s22 = int_to_ptr.vmem [resolvable:$true] %s265_s22 }
  0x13   : > { %p1325_p13 = pnand %p1456_p10, %p988_p12  ;;  %p1071_p1 = scmp.ne.s32.totalorder %s250_s19, %s1070_s23 }
  0x14   : > { %p1078_p7 = scmp.lt.s32.totalorder %s250_s19, %s250_s19  ;;  %p1079_p8 = scmp.lt.s32.totalorder %s1070_s23, %s1070_s23 }
  0x15   : > { %p1061_p0 = pneg %p1325_p13 }
  0x16   : > { %p1080_p2 = por %p1079_p8, %p1078_p7 }
  0x17   : > { %p1073_p3 = pnand %p1071_p1, %p1061_p0 }
  0x19   : > { %p1074_p4 = pneg %p1073_p3 }
  0x1b   : > { %p1081_p12 = pnand %p1080_p2, %p1074_p4 }
  0x1d   : > { %1084 = shalt.err (!%p1081_p12)
}
  0x1e   : > { %s1211_s24 = smov 512   ;;  %s1212_s25 = smov 32  }
  0x1f   : > { %991 = dma.hbm_to_vmem [thread:$0]  (!%p1325_p13), %s1449_s3, 16384, %s250_s19, [#allocation4], %s1211_s24, %s1211_s24, %s1212_s25  }
  0x20   : > { %s1096_s12 = scalar_lea.vmem %s266_s22, 2048  ;;  %p1104_p10 = scmp.lt.s32.totalorder %s266_s22, %s266_s22 }
  0x21   : > { %p1097_p9 = scmp.ne.s32.totalorder %s266_s22, %s1096_s12  ;;  %p1105_p6 = scmp.lt.s32.totalorder %s1096_s12, %s1096_s12 }
  0x23   : > { %p1099_p1 = pnand %p1097_p9, %p1061_p0  ;;  %p1106_p7 = por %p1105_p6, %p1104_p10 }
  0x25   : > { %p1100_p3 = pneg %p1099_p1 }
  0x27   : > { %p1107_p2 = pnand %p1106_p7, %p1100_p3 }
  0x29   : > { %1110 = shalt.err (!%p1107_p2)
}
  0x2a   : > { %s1213_s13 = smov 128   ;;  %s1214_s18 = smov 8  }
  0x2b   : > { %994 = dma.hbm_to_vmem [thread:$0]  (!%p1325_p13), %s1451_s5, 2048, %s266_s22, [#allocation7], %s1213_s13, %s1213_s13, %s1214_s18  }
  0x2c   : > { %298 = sbr.rel (%p1317_p11) target bundleno = 654 (0x28e), region = 48  ;;  %p1461_p4 = scmp.eq.s32.totalorder (!%p1317_p11), %s1286_s9, 0 }
  0x31   : > { %1178 = dma.done.wait (%p1461_p4), [#allocation4], 16384   ;;  %p1462_p9 = pmov %p1461_p4 }
  0x32   : > { %p1463_p6 = pmov %p1461_p4 }
  0x33   : > { %1180 = vsyncadd (%p1462_p9), [#allocation4], 4294950912 }
  0x34   : > { %1182 = dma.done.wait (%p1463_p6), [#allocation7], 2048   ;;  %p1464_p10 = pmov %p1461_p4 }
  0x35   : > { %s334_s19 = sand.u32 1, %s1199_s28   ;;  %p339_p13 = scmp.lt.s32.totalorder %s1286_s9, 5 }
  0x36   : > { %1184 = vsyncadd (%p1464_p10), [#allocation7], 4294965248  ;;  %s1361_s17 = sshll.u32 %s334_s19, 3  ;;  %p1465_p11 = scmp.ne.s32.totalorder %s1286_s9, 0 }
  0x37   : > { %s340_s20 = scalar_select %p339_p13, %s1286_s9, 5 }
  0x38   : > { %s336_s18 = scalar_lea.vmem [#allocation8], %s1361_s17  ;;  %350 = sbr.rel (%p1465_p11) target bundleno = 63 (0x3f), region = 60 }
  0x39   : > { %s910_s22 = sshll.u32 %s340_s20, 3 }
  0x3a   : > { %s1367_s26 = scalar_lea.vmem %s1446_s0, %s910_s22  ;;  %s346_s13 = scalar_lea.vmem %s1447_s1, %s910_s22 }
  0x3d   : > { %v351_v0 = vld [vmem:[%s1448_s2] sm:$0xff] }
  0x3e   : > { %352 = vst [vmem:[#allocation9] sm:$0xff] %v351_v0 }
  0x3f PF: > { %v354_v1 = vld [vmem:[%s346_s13] sm:$0xff]  ;;  %v427_v2 = vld [vmem:[#allocation3 + $0x1e8] sm:$0xff]  ;;  %v1215_v4 = vmov 0   ;;  %v429_v16 = vld [vmem:[#allocation3 + $0x1f8] sm:$0xff]  ;;  %vm1217_vm0 = vmmov 0   ;;  %s1218_s24 = smov [#allocation9]  }
  0x40   : > { %v426_v3 = vld [vmem:[#allocation3 + $0x1e0] sm:$0xff]  ;;  %1048 = vset.pattern.permute.xlu0 %v1215_v4  ;;  %516 = vmatprep.subr.mxu0 %v427_v2  ;;  %v423_v5 = vld [vmem:[#allocation3 + $0x1c8] sm:$0xff]  ;;  %v428_v17 = vld [vmem:[#allocation3 + $0x1f0] sm:$0xff]  ;;  %s797_s25 = sshll.u32 %s1218_s24, 4  ;;  %p1466_p8 = scmp.eq.s32.totalorder %s1286_s9, 5  ;;  %s798_s25 = int_to_ptr.vmem [resolvable:$true] %s797_s25 }
  0x41   : > { %v422_v6 = vld [vmem:[#allocation3 + $0x1c0] sm:$0xff]  ;;  %357 = vperm.xlu0 %1048, %v354_v1   ;;  %517 = vmatpush1.msra.mxu0 %v426_v3  ;;  %v419_v7 = vld [vmem:[#allocation3 + $0x1a8] sm:$0xff]  ;;  %v425_v19 = vld [vmem:[#allocation3 + $0x1d8] sm:$0xff]  ;;  %p1118_p3 = scmp.lt.s32.totalorder %s798_s25, %s798_s25 }
  0x42   : > { %518 = vmatprep.subr.mxu0 %v423_v5  ;;  %v418_v8 = vld [vmem:[#allocation3 + $0x1a0] sm:$0xff]  ;;  %v415_v9 = vld [vmem:[#allocation3 + $0x188] sm:$0xff]  ;;  %587 = vmatprep.subr.mxu1 %v429_v16  ;;  %v424_v21 = vld [vmem:[#allocation3 + $0x1d0] sm:$0xff] }
  0x43   : > { %519 = vmatpush1.msra.mxu0 %v422_v6  ;;  %v414_v10 = vld [vmem:[#allocation3 + $0x180] sm:$0xff]  ;;  %v411_v11 = vld [vmem:[#allocation3 + $0x168] sm:$0xff]  ;;  %588 = vmatpush1.msra.mxu1 %v428_v17  ;;  %v421_v22 = vld [vmem:[#allocation3 + $0x1b8] sm:$0xff] }
  0x44   : > { %520 = vmatprep.subr.mxu0 %v419_v7  ;;  %v410_v12 = vld [vmem:[#allocation3 + $0x160] sm:$0xff]  ;;  %v407_v13 = vld [vmem:[#allocation3 + $0x148] sm:$0xff]  ;;  %589 = vmatprep.subr.mxu1 %v425_v19  ;;  %v420_v24 = vld [vmem:[#allocation3 + $0x1b0] sm:$0xff] }
  0x45   : > { %521 = vmatpush1.msra.mxu0 %v418_v8  ;;  %v406_v14 = vld [vmem:[#allocation3 + $0x140] sm:$0xff]  ;;  %v403_v15 = vld [vmem:[#allocation3 + $0x128] sm:$0xff]  ;;  %590 = vmatpush1.msra.mxu1 %v424_v21  ;;  %v417_v26 = vld [vmem:[#allocation3 + $0x198] sm:$0xff] }
  0x46   : > { %522 = vmatprep.subr.mxu0 %v415_v9  ;;  %v402_v18 = vld [vmem:[#allocation3 + $0x120] sm:$0xff]  ;;  %v399_v20 = vld [vmem:[#allocation3 + $0x108] sm:$0xff]  ;;  %591 = vmatprep.subr.mxu1 %v421_v22  ;;  %v416_v28 = vld [vmem:[#allocation3 + $0x190] sm:$0xff] }
  0x47   : > { %523 = vmatpush1.msra.mxu0 %v414_v10  ;;  %v398_v23 = vld [vmem:[#allocation3 + $0x100] sm:$0xff]  ;;  %v395_v25 = vld [vmem:[#allocation3 + $0xe8] sm:$0xff]  ;;  %592 = vmatpush1.msra.mxu1 %v420_v24  ;;  %v413_v30 = vld [vmem:[#allocation3 + $0x178] sm:$0xff] }
  0x48   : > { %524 = vmatprep.subr.mxu0 %v411_v11  ;;  %v394_v27 = vld [vmem:[#allocation3 + $0xe0] sm:$0xff]  ;;  %v391_v29 = vld [vmem:[#allocation3 + $0xc8] sm:$0xff]  ;;  %593 = vmatprep.subr.mxu1 %v417_v26  ;;  %v412_v32 = vld [vmem:[#allocation3 + $0x170] sm:$0xff] }
  0x49   : > { %525 = vmatpush1.msra.mxu0 %v410_v12  ;;  %v390_v31 = vld [vmem:[#allocation3 + $0xc0] sm:$0xff]  ;;  %v387_v33 = vld [vmem:[#allocation3 + $0xa8] sm:$0xff]  ;;  %594 = vmatpush1.msra.mxu1 %v416_v28  ;;  %v409_v34 = vld [vmem:[#allocation3 + $0x158] sm:$0xff] }
  0x4a   : > { %526 = vmatprep.subr.mxu0 %v407_v13  ;;  %v386_v35 = vld [vmem:[#allocation3 + $0xa0] sm:$0xff]  ;;  %595 = vmatprep.subr.mxu1 %v413_v30  ;;  %v408_v36 = vld [vmem:[#allocation3 + $0x150] sm:$0xff]  ;;  %v383_v37 = vld [vmem:[#allocation3 + $0x88] sm:$0xff] }
  0x4b   : > { %527 = vmatpush1.msra.mxu0 %v406_v14  ;;  %596 = vmatpush1.msra.mxu1 %v412_v32  ;;  %v405_v38 = vld [vmem:[#allocation3 + $0x138] sm:$0xff]  ;;  %v382_v39 = vld [vmem:[#allocation3 + $0x80] sm:$0xff]  ;;  %v404_v40 = vld [vmem:[#allocation3 + $0x130] sm:$0xff] }
  0x4c   : > { %528 = vmatprep.subr.mxu0 %v403_v15  ;;  %597 = vmatprep.subr.mxu1 %v409_v34  ;;  %v379_v41 = vld [vmem:[#allocation3 + $0x68] sm:$0xff]  ;;  %v401_v42 = vld [vmem:[#allocation3 + $0x118] sm:$0xff]  ;;  %v378_v43 = vld [vmem:[#allocation3 + $0x60] sm:$0xff] }
  0x4d   : > { %529 = vmatpush1.msra.mxu0 %v402_v18  ;;  %598 = vmatpush1.msra.mxu1 %v408_v36  ;;  %v400_v44 = vld [vmem:[#allocation3 + $0x110] sm:$0xff]  ;;  %v375_v45 = vld [vmem:[#allocation3 + $0x48] sm:$0xff]  ;;  %v397_v46 = vld [vmem:[#allocation3 + $0xf8] sm:$0xff] }
  0x4e   : > { %530 = vmatprep.subr.mxu0 %v399_v20  ;;  %599 = vmatprep.subr.mxu1 %v405_v38  ;;  %v374_v47 = vld [vmem:[#allocation3 + $0x40] sm:$0xff]  ;;  %v396_v48 = vld [vmem:[#allocation3 + $0xf0] sm:$0xff]  ;;  %v371_v49 = vld [vmem:[#allocation3 + $0x28] sm:$0xff] }
  0x4f   : > { %531 = vmatpush1.msra.mxu0 %v398_v23  ;;  %600 = vmatpush1.msra.mxu1 %v404_v40  ;;  %v393_v50 = vld [vmem:[#allocation3 + $0xd8] sm:$0xff]  ;;  %v370_v51 = vld [vmem:[#allocation3 + $0x20] sm:$0xff]  ;;  %v392_v52 = vld [vmem:[#allocation3 + $0xd0] sm:$0xff] }
  0x50   : > { %532 = vmatprep.subr.mxu0 %v395_v25  ;;  %601 = vmatprep.subr.mxu1 %v401_v42  ;;  %v367_v53 = vld [vmem:[#allocation3 + $0x8] sm:$0xff]  ;;  %v389_v54 = vld [vmem:[#allocation3 + $0xb8] sm:$0xff]  ;;  %v366_v55 = vld [vmem:[#allocation3] sm:$0xff] }
  0x51   : > { %533 = vmatpush1.msra.mxu0 %v394_v27  ;;  %602 = vmatpush1.msra.mxu1 %v400_v44  ;;  %v388_v56 = vld [vmem:[#allocation3 + $0xb0] sm:$0xff]  ;;  %v491_v57 = vld [vmem:[#allocation3 + $0x3e8] sm:$0xff]  ;;  %v385_v58 = vld [vmem:[#allocation3 + $0x98] sm:$0xff] }
  0x52   : > { %534 = vmatprep.subr.mxu0 %v391_v29  ;;  %603 = vmatprep.subr.mxu1 %v397_v46  ;;  %v490_v59 = vld [vmem:[#allocation3 + $0x3e0] sm:$0xff]  ;;  %v384_v60 = vld [vmem:[#allocation3 + $0x90] sm:$0xff]  ;;  %v487_v61 = vld [vmem:[#allocation3 + $0x3c8] sm:$0xff] }
  0x53   : > { %535 = vmatpush1.msra.mxu0 %v390_v31  ;;  %604 = vmatpush1.msra.mxu1 %v396_v48  ;;  %v381_v62 = vld [vmem:[#allocation3 + $0x78] sm:$0xff]  ;;  %v486_v63 = vld [vmem:[#allocation3 + $0x3c0] sm:$0xff]  ;;  %v380_v0 = vld [vmem:[#allocation3 + $0x70] sm:$0xff] }
  0x54   : > { %536 = vmatprep.subr.mxu0 %v387_v33  ;;  %605 = vmatprep.subr.mxu1 %v393_v50  ;;  %v483_v1 = vld [vmem:[#allocation3 + $0x3a8] sm:$0xff]  ;;  %v377_v2 = vld [vmem:[#allocation3 + $0x58] sm:$0xff]  ;;  %v482_v3 = vld [vmem:[#allocation3 + $0x3a0] sm:$0xff] }
  0x55   : > { %537 = vmatpush1.msra.mxu0 %v386_v35  ;;  %606 = vmatpush1.msra.mxu1 %v392_v52  ;;  %v376_v4 = vld [vmem:[#allocation3 + $0x50] sm:$0xff]  ;;  %v479_v5 = vld [vmem:[#allocation3 + $0x388] sm:$0xff]  ;;  %v373_v6 = vld [vmem:[#allocation3 + $0x38] sm:$0xff] }
  0x56   : > { %538 = vmatprep.subr.mxu0 %v383_v37  ;;  %607 = vmatprep.subr.mxu1 %v389_v54  ;;  %v478_v7 = vld [vmem:[#allocation3 + $0x380] sm:$0xff]  ;;  %v372_v8 = vld [vmem:[#allocation3 + $0x30] sm:$0xff]  ;;  %v475_v9 = vld [vmem:[#allocation3 + $0x368] sm:$0xff] }
  0x57   : > { %539 = vmatpush1.msra.mxu0 %v382_v39  ;;  %608 = vmatpush1.msra.mxu1 %v388_v56  ;;  %v369_v10 = vld [vmem:[#allocation3 + $0x18] sm:$0xff]  ;;  %v474_v11 = vld [vmem:[#allocation3 + $0x360] sm:$0xff]  ;;  %v368_v12 = vld [vmem:[#allocation3 + $0x10] sm:$0xff] }
  0x58   : > { %540 = vmatprep.subr.mxu0 %v379_v41  ;;  %609 = vmatprep.subr.mxu1 %v385_v58  ;;  %v471_v13 = vld [vmem:[#allocation3 + $0x348] sm:$0xff]  ;;  %v493_v14 = vld [vmem:[#allocation3 + $0x3f8] sm:$0xff]  ;;  %v470_v15 = vld [vmem:[#allocation3 + $0x340] sm:$0xff] }
  0x59   : > { %541 = vmatpush1.msra.mxu0 %v378_v43  ;;  %610 = vmatpush1.msra.mxu1 %v384_v60  ;;  %v492_v16 = vld [vmem:[#allocation3 + $0x3f0] sm:$0xff]  ;;  %v467_v17 = vld [vmem:[#allocation3 + $0x328] sm:$0xff]  ;;  %v489_v18 = vld [vmem:[#allocation3 + $0x3d8] sm:$0xff] }
  0x5a   : > { %542 = vmatprep.subr.mxu0 %v375_v45  ;;  %611 = vmatprep.subr.mxu1 %v381_v62  ;;  %v466_v19 = vld [vmem:[#allocation3 + $0x320] sm:$0xff]  ;;  %v488_v20 = vld [vmem:[#allocation3 + $0x3d0] sm:$0xff]  ;;  %v463_v21 = vld [vmem:[#allocation3 + $0x308] sm:$0xff] }
  0x5b   : > { %543 = vmatpush1.msra.mxu0 %v374_v47  ;;  %612 = vmatpush1.msra.mxu1 %v380_v0  ;;  %v485_v22 = vld [vmem:[#allocation3 + $0x3b8] sm:$0xff]  ;;  %v462_v23 = vld [vmem:[#allocation3 + $0x300] sm:$0xff]  ;;  %v484_v24 = vld [vmem:[#allocation3 + $0x3b0] sm:$0xff] }
  0x5c   : > { %544 = vmatprep.subr.mxu0 %v371_v49  ;;  %613 = vmatprep.subr.mxu1 %v377_v2  ;;  %v459_v25 = vld [vmem:[#allocation3 + $0x2e8] sm:$0xff]  ;;  %v481_v26 = vld [vmem:[#allocation3 + $0x398] sm:$0xff]  ;;  %v458_v27 = vld [vmem:[#allocation3 + $0x2e0] sm:$0xff] }
  0x5d   : > { %545 = vmatpush1.msra.mxu0 %v370_v51  ;;  %614 = vmatpush1.msra.mxu1 %v376_v4  ;;  %v480_v28 = vld [vmem:[#allocation3 + $0x390] sm:$0xff]  ;;  %v455_v29 = vld [vmem:[#allocation3 + $0x2c8] sm:$0xff]  ;;  %v477_v30 = vld [vmem:[#allocation3 + $0x378] sm:$0xff] }
  0x5e   : > { %546 = vmatprep.subr.mxu0 %v367_v53  ;;  %615 = vmatprep.subr.mxu1 %v373_v6  ;;  %v454_v31 = vld [vmem:[#allocation3 + $0x2c0] sm:$0xff]  ;;  %v476_v32 = vld [vmem:[#allocation3 + $0x370] sm:$0xff]  ;;  %v451_v33 = vld [vmem:[#allocation3 + $0x2a8] sm:$0xff] }
  0x5f   : > { %547 = vmatpush1.msra.mxu0 %v366_v55  ;;  %616 = vmatpush1.msra.mxu1 %v372_v8  ;;  %v473_v34 = vld [vmem:[#allocation3 + $0x358] sm:$0xff]  ;;  %v450_v35 = vld [vmem:[#allocation3 + $0x2a0] sm:$0xff]  ;;  %v472_v36 = vld [vmem:[#allocation3 + $0x350] sm:$0xff]  ;;  %v1216_v8 = vmov 0.0  }
  0x60   : > { %548 = vmatprep.subr.mxu0 %v491_v57  ;;  %617 = vmatprep.subr.mxu1 %v369_v10  ;;  %v447_v37 = vld [vmem:[#allocation3 + $0x288] sm:$0xff]  ;;  %v469_v38 = vld [vmem:[#allocation3 + $0x338] sm:$0xff]  ;;  %v446_v39 = vld [vmem:[#allocation3 + $0x280] sm:$0xff] }
  0x61   : > { %549 = vmatpush2.msra.mxu0 %v490_v59  ;;  %618 = vmatpush1.msra.mxu1 %v368_v12  ;;  %v468_v40 = vld [vmem:[#allocation3 + $0x330] sm:$0xff]  ;;  %v443_v41 = vld [vmem:[#allocation3 + $0x268] sm:$0xff]  ;;  %v465_v42 = vld [vmem:[#allocation3 + $0x318] sm:$0xff] }
  0x62   : > { %550 = vmatprep.subr.mxu0 %v487_v61  ;;  %619 = vmatprep.subr.mxu1 %v493_v14  ;;  %v442_v43 = vld [vmem:[#allocation3 + $0x260] sm:$0xff]  ;;  %v464_v44 = vld [vmem:[#allocation3 + $0x310] sm:$0xff]  ;;  %v439_v45 = vld [vmem:[#allocation3 + $0x248] sm:$0xff] }
  0x63   : > { %551 = vmatpush2.msra.mxu0 %v486_v63  ;;  %620 = vmatpush2.msra.mxu1 %v492_v16  ;;  %v461_v46 = vld [vmem:[#allocation3 + $0x2f8] sm:$0xff]  ;;  %v438_v47 = vld [vmem:[#allocation3 + $0x240] sm:$0xff]  ;;  %v460_v48 = vld [vmem:[#allocation3 + $0x2f0] sm:$0xff] }
  0x64   : > { %552 = vmatprep.subr.mxu0 %v483_v1  ;;  %621 = vmatprep.subr.mxu1 %v489_v18  ;;  %v435_v49 = vld [vmem:[#allocation3 + $0x228] sm:$0xff]  ;;  %v457_v50 = vld [vmem:[#allocation3 + $0x2d8] sm:$0xff]  ;;  %v434_v51 = vld [vmem:[#allocation3 + $0x220] sm:$0xff] }
  0x65   : > { %553 = vmatpush2.msra.mxu0 %v482_v3  ;;  %622 = vmatpush2.msra.mxu1 %v488_v20  ;;  %v456_v52 = vld [vmem:[#allocation3 + $0x2d0] sm:$0xff]  ;;  %v431_v53 = vld [vmem:[#allocation3 + $0x208] sm:$0xff]  ;;  %v453_v54 = vld [vmem:[#allocation3 + $0x2b8] sm:$0xff] }
  0x66   : > { %554 = vmatprep.subr.mxu0 %v479_v5  ;;  %623 = vmatprep.subr.mxu1 %v485_v22  ;;  %v430_v55 = vld [vmem:[#allocation3 + $0x200] sm:$0xff]  ;;  %v452_v56 = vld [vmem:[#allocation3 + $0x2b0] sm:$0xff]  ;;  %v449_v57 = vld [vmem:[#allocation3 + $0x298] sm:$0xff] }
  0x67   : > { %555 = vmatpush2.msra.mxu0 %v478_v7  ;;  %624 = vmatpush2.msra.mxu1 %v484_v24  ;;  %v448_v58 = vld [vmem:[#allocation3 + $0x290] sm:$0xff]  ;;  %v445_v59 = vld [vmem:[#allocation3 + $0x278] sm:$0xff]  ;;  %v361_v6 = vld [vmem:[%s1367_s26] sm:$0xff]  ;;  %v496_v24 = vlaneseq  ;;  %s1111_s26 = scalar_lea.vmem %s798_s25, 128 }
  0x68   : > { %556 = vmatprep.subr.mxu0 %v475_v9  ;;  %625 = vmatprep.subr.mxu1 %v481_v26  ;;  %v444_v60 = vld [vmem:[#allocation3 + $0x270] sm:$0xff]  ;;  %v441_v61 = vld [vmem:[#allocation3 + $0x258] sm:$0xff]  ;;  %v690_v10 = vld [vmem:[#allocation6 + $0x68] sm:$0xff]  ;;  %p1112_p0 = scmp.ne.s32.totalorder %s798_s25, %s1111_s26  ;;  %p1119_p7 = scmp.lt.s32.totalorder %s1111_s26, %s1111_s26 }
  0x69   : > { %557 = vmatpush2.msra.mxu0 %v474_v11  ;;  %626 = vmatpush2.msra.mxu1 %v480_v28  ;;  %v440_v62 = vld [vmem:[#allocation3 + $0x250] sm:$0xff]  ;;  %v437_v63 = vld [vmem:[#allocation3 + $0x238] sm:$0xff]  ;;  %v689_v11 = vld [vmem:[#allocation6 + $0x60] sm:$0xff] }
  0x6a   : > { %558 = vmatprep.subr.mxu0 %v471_v13  ;;  %627 = vmatprep.subr.mxu1 %v477_v30  ;;  %v436_v0 = vld [vmem:[#allocation3 + $0x230] sm:$0xff]  ;;  %v433_v1 = vld [vmem:[#allocation3 + $0x218] sm:$0xff]  ;;  %v686_v14 = vld [vmem:[#allocation6 + $0x48] sm:$0xff]  ;;  %p1113_p12 = pnand %p1112_p0, %p1466_p8  ;;  %p1120_p2 = por %p1119_p7, %p1118_p3 }
  0x6b   : > { %559 = vmatpush2.msra.mxu0 %v470_v15  ;;  %628 = vmatpush2.msra.mxu1 %v476_v32  ;;  %v432_v2 = vld [vmem:[#allocation3 + $0x210] sm:$0xff]  ;;  %v692_v7 = vld [vmem:[#allocation6 + $0x78] sm:$0xff]  ;;  %v685_v15 = vld [vmem:[#allocation6 + $0x40] sm:$0xff] }
  0x6c   : > { %560 = vmatprep.subr.mxu0 %v467_v17  ;;  %629 = vmatprep.subr.mxu1 %v473_v34  ;;  %v353_v3 = vld [vmem:[#allocation9] sm:$0xff]  ;;  %v688_v12 = vld [vmem:[#allocation6 + $0x58] sm:$0xff]  ;;  %v682_v18 = vld [vmem:[#allocation6 + $0x28] sm:$0xff]  ;;  %p1114_p1 = pneg %p1113_p12 }
  0x6d   : > { %561 = vmatpush2.msra.mxu0 %v466_v19  ;;  %630 = vmatpush2.msra.mxu1 %v472_v36  ;;  %v691_v9 = vld [vmem:[#allocation6 + $0x70] sm:$0xff]  ;;  %v684_v16 = vld [vmem:[#allocation6 + $0x38] sm:$0xff]  ;;  %v681_v19 = vld [vmem:[#allocation6 + $0x20] sm:$0xff] }
  0x6e   : > { %562 = vmatprep.subr.mxu0 %v463_v21  ;;  %631 = vmatprep.subr.mxu1 %v469_v38  ;;  %v687_v13 = vld [vmem:[#allocation6 + $0x50] sm:$0xff]  ;;  %v680_v20 = vld [vmem:[#allocation6 + $0x18] sm:$0xff]  ;;  %v678_v22 = vld [vmem:[#allocation6 + $0x8] sm:$0xff]  ;;  %p1121_p4 = pnand %p1120_p2, %p1114_p1 }
  0x6f   : > { %563 = vmatpush2.msra.mxu0 %v462_v23  ;;  %632 = vmatpush2.msra.mxu1 %v468_v40  ;;  %v683_v17 = vld [vmem:[#allocation6 + $0x30] sm:$0xff]  ;;  %v677_v23 = vld [vmem:[#allocation6] sm:$0xff] }
  0x70   : > { %564 = vmatprep.subr.mxu0 %v459_v25  ;;  %633 = vmatprep.subr.mxu1 %v465_v42  ;;  %v679_v21 = vld [vmem:[#allocation6 + $0x10] sm:$0xff]  ;;  %v497_v25 = vshrl.u32 %v496_v24, 7 }
  0x71   : > { %565 = vmatpush2.msra.mxu0 %v458_v27  ;;  %634 = vmatpush2.msra.mxu1 %v464_v44  ;;  %v494_v27 = vld [vmem:[%s1450_s4] sm:$0xf] }
  0x72   : > { %566 = vmatprep.subr.mxu0 %v455_v29  ;;  %635 = vmatprep.subr.mxu1 %v461_v46  ;;  %v498_v26 = vsub.s32 0, %v497_v25  ;;  %v502_v29 = vsub.s32 1, %v497_v25 }
  0x73   : > { %567 = vmatpush2.msra.mxu0 %v454_v31  ;;  %636 = vmatpush2.msra.mxu1 %v460_v48 }
  0x74   : > { %568 = vmatprep.subr.mxu0 %v451_v33  ;;  %637 = vmatprep.subr.mxu1 %v457_v50  ;;  %v499_v28 = vrot.slane %v494_v27, %v498_v26  ;;  %v503_v33 = vrot.slane %v494_v27, %v502_v29 }
  0x75   : > { %569 = vmatpush2.msra.mxu0 %v450_v35  ;;  %638 = vmatpush2.msra.mxu1 %v456_v52 }
  0x76   : > { %570 = vmatprep.subr.mxu0 %v447_v37  ;;  %639 = vmatprep.subr.mxu1 %v453_v54 }
  0x77   : > { %571 = vmatpush2.msra.mxu0 %v446_v39  ;;  %640 = vmatpush2.msra.mxu1 %v452_v56  ;;  %v510_v39 = vsub.s32 3, %v497_v25 }
  0x78   : > { %572 = vmatprep.subr.mxu0 %v443_v41  ;;  %641 = vmatprep.subr.mxu1 %v449_v57  ;;  %v506_v41 = vsub.s32 2, %v497_v25 }
  0x79   : > { %573 = vmatpush2.msra.mxu0 %v442_v43  ;;  %642 = vmatpush2.msra.mxu1 %v448_v58  ;;  %v511_v43 = vrot.slane %v494_v27, %v510_v39 }
  0x7a   : > { %574 = vmatprep.subr.mxu0 %v439_v45  ;;  %643 = vmatprep.subr.mxu1 %v445_v59  ;;  %v507_v46 = vrot.slane %v494_v27, %v506_v41 }
  0x7b   : > { %575 = vmatpush2.msra.mxu0 %v438_v47  ;;  %644 = vmatpush2.msra.mxu1 %v444_v60 }
  0x7c   : > { %576 = vmatprep.subr.mxu0 %v435_v49  ;;  %645 = vmatprep.subr.mxu1 %v441_v61 }
  0x7d   : > { %577 = vmatpush2.msra.mxu0 %v434_v51  ;;  %646 = vmatpush2.msra.mxu1 %v440_v62 }
  0x7e   : > { %578 = vmatprep.subr.mxu0 %v431_v53  ;;  %647 = vmatprep.subr.mxu1 %v437_v63 }
  0x7f   : > { %579 = vmatpush2.msra.mxu0 %v430_v55  ;;  %648 = vmatpush2.msra.mxu1 %v436_v0 }
  0x80   : > { %649 = vmatprep.subr.mxu1 %v433_v1  ;;  %939 = vmatprep.subr.mxu0 %v1216_v8 }
  0x81   : > { %650 = vmatpush2.msra.mxu1 %v432_v2 }
  0xbc   : > { %v358_v4 = vpop.permute.xlu0 %357 }
  0xbd   : > { %v1378_v5 = vmul.f32 %v358_v4, %v353_v3 }
  0xbf   : > { %580 = vmatprep.mubr.f32.mxu0 %v1378_v5  ;;  %651 = vmatprep.mubr.f32.mxu1 %v1378_v5 }
  0xc0   : > { %581 = vmatmul.mubr.f32.vlgmr.msra.gmra.mxu0 %v361_v6  ;;  %652 = vmatmul.mubr.f32.vlgmr.msra.gmra.mxu1 %v361_v6 }
  0xc1   : > { %940 = vmatpush3.msra.mxu0 %v692_v7  ;;  %971 = vmatprep.mubr.msk.f32.mxu0 %vm1217_vm0, %v1216_v8 }
  0xc2   : > { %941 = vmatprep.subr.mxu0 %v1216_v8 }
  0xc3   : > { %942 = vmatpush3.msra.mxu0 %v691_v9 }
  0xc4   : > { %943 = vmatprep.subr.mxu0 %v1216_v8 }
  0xc5   : > { %944 = vmatpush3.msra.mxu0 %v690_v10 }
  0xc6   : > { %945 = vmatprep.subr.mxu0 %v1216_v8 }
  0xc7   : > { %946 = vmatpush3.msra.mxu0 %v689_v11 }
  0xc8   : > { %947 = vmatprep.subr.mxu0 %v1216_v8 }
  0xc9   : > { %948 = vmatpush3.msra.mxu0 %v688_v12 }
  0xca   : > { %949 = vmatprep.subr.mxu0 %v1216_v8 }
  0xcb   : > { %950 = vmatpush3.msra.mxu0 %v687_v13 }
  0xcc   : > { %951 = vmatprep.subr.mxu0 %v1216_v8 }
  0xcd   : > { %952 = vmatpush3.msra.mxu0 %v686_v14 }
  0xce   : > { %953 = vmatprep.subr.mxu0 %v1216_v8 }
  0xcf   : > { %954 = vmatpush3.msra.mxu0 %v685_v15 }
  0xd0   : > { %955 = vmatprep.subr.mxu0 %v1216_v8 }
  0xd1   : > { %956 = vmatpush3.msra.mxu0 %v684_v16 }
  0xd2   : > { %957 = vmatprep.subr.mxu0 %v1216_v8 }
  0xd3   : > { %958 = vmatpush3.msra.mxu0 %v683_v17 }
  0xd4   : > { %959 = vmatprep.subr.mxu0 %v1216_v8 }
  0xd5   : > { %960 = vmatpush3.msra.mxu0 %v682_v18 }
  0xd6   : > { %961 = vmatprep.subr.mxu0 %v1216_v8 }
  0xd7   : > { %962 = vmatpush3.msra.mxu0 %v681_v19 }
  0xd8   : > { %963 = vmatprep.subr.mxu0 %v1216_v8 }
  0xd9   : > { %964 = vmatpush3.msra.mxu0 %v680_v20 }
  0xda   : > { %965 = vmatprep.subr.mxu0 %v1216_v8 }
  0xdb   : > { %966 = vmatpush3.msra.mxu0 %v679_v21 }
  0xdc   : > { %967 = vmatprep.subr.mxu0 %v1216_v8 }
  0xdd   : > { %968 = vmatpush3.msra.mxu0 %v678_v22 }
  0xde   : > { %969 = vmatprep.subr.mxu0 %v1216_v8 }
  0xdf   : > { %970 = vmatpush3.msra.mxu0 %v677_v23 }
 0x180   : > { %v582_v30 = vpop.f32.mrf.mxu0  ;;  %v653_v40 = vpop.f32.mrf.mxu1 }
 0x181   : > { %v583_v31 = vadd.f32 %v582_v30, %v499_v28  ;;  %v654_v49 = vadd.f32 %v653_v40, %v507_v46 }
 0x182   : > { %v584_v34 = vpop.f32.mrf.mxu0  ;;  %v655_v44 = vpop.f32.mrf.mxu1 }
 0x183   : > { %v913_v32 = vmul.f32 -1.442695, %v583_v31  ;;  %v585_v35 = vadd.f32 %v584_v34, %v503_v33  ;;  %v656_v47 = vadd.f32 %v655_v44, %v511_v43 }
 0x185   : > { %1049 = vpow2.f32 %v913_v32  ;;  %v914_v36 = vmul.f32 -1.442695, %v585_v35 }
 0x187   : > { %1051 = vpow2.f32 %v914_v36 }
 0x192   : > { %v1050_v37 = vpop.eup %1049 }
 0x193   : > { %v661_v38 = vadd.f32 1.0, %v1050_v37 }
 0x194   : > { %v1052_v42 = vpop.eup %1051 }
 0x195   : > { %1053 = vrcp.f32 %v661_v38  ;;  %v667_v45 = vadd.f32 1.0, %v1052_v42 }
 0x197   : > { %1055 = vrcp.f32 %v667_v45 }
 0x1a2   : > { %v1054_v48 = vpop.eup %1053 }
 0x1a3   : > { %v670_v50 = vmul.f32 %v1054_v48, %v656_v47 }
 0x1a4   : > { %v1056_v52 = vpop.eup %1055 }
 0x1a5   : > { %v671_v51 = vadd.f32 %v670_v50, %v654_v49  ;;  %v673_v53 = vsub.f32 1.0, %v1056_v52  ;;  %v675_v56 = vmul.f32 %v1056_v52, %v1378_v5 }
 0x1a7   : > { %1057 = vtanh.f32 %v671_v51 }
 0x1b4   : > { %v1058_v54 = vpop.eup %1057 }
 0x1b5   : > { %v674_v55 = vmul.f32 %v1058_v54, %v673_v53 }
 0x1b7   : > { %v676_v57 = vadd.f32 %v675_v56, %v674_v55 }
 0x1b9   : > { %972 = vmatmul.mubr.f32.vlgmr.msra.gmra.mxu0 %v676_v57  ;;  %771 = vst [vmem:[#allocation9] sm:$0xff] %v676_v57 }
 0x1ba   : > { %1124 = shalt.err (!%p1121_p4)
}
 0x1bb   : > { %p1467_p9 = pmov %p1466_p8  ;;  %v915_v58 = vld [vmem:[%s1452_s6] ss:$0 sm:$0xff]  ;;  %s917_s23 = sshll.u32 %s1286_s9, 7 }
 0x1bc   : > { %s786_s20 = sshll.u32 %s336_s18, 4  ;;  %s1403_s26 = scalar_lea.hbm %s1453_s7, %s917_s23  ;;  %s787_s20 = int_to_ptr.vmem [resolvable:$true] %s786_s20 }
 0x1bd   : > { %984 = dma.vmem_to_hbm [thread:$0]  (%p1467_p9), %s798_s25, 128, %s1454_s8, [#allocation10]  }
 0x1be   : > { %s773_s25 = scalar_lea.sflag [#allocation5], %s334_s19  ;;  %s1135_s10 = scalar_lea.vmem %s787_s20, 128 }
 0x1bf   : > { %p1136_p6 = scmp.ne.s32.totalorder %s787_s20, %s1135_s10  ;;  %s1219_s12 = smov [#allocation8]  }
 0x1c0   : > { %s1139_s13 = sshll.u32 %s1219_s12, 4  ;;  %s1140_s13 = int_to_ptr.vmem [resolvable:$false] %s1139_s13 }
 0x1c1   : > { %p1137_p10 = pnand %p1136_p6, %p1305_p5  ;;  %s1141_s21 = scalar_lea.vmem %s1140_s13, 256 }
 0x1c2   : > { %p1142_p11 = scmp.lt.s32.totalorder %s787_s20, %s1140_s13  ;;  %p1143_p0 = scmp.lt.s32.totalorder %s1141_s21, %s1135_s10 }
 0x1c3   : > { %p1138_p13 = pneg %p1137_p10 }
 0x1c4   : > { %p1144_p8 = por %p1143_p0, %p1142_p11 }
 0x1c6   : > { %p1145_p12 = pnand %p1144_p8, %p1138_p13 }
 0x279   : > { %v766_v59 = vpop.f32.mrf.mxu0 }
 0x27a   : > { %v767_v60 = vadd.f32 %v915_v58, %v766_v59 }
 0x27b   : > { %v973_v61 = vpop.f32.mrf.mxu0 }
 0x27c   : > { %770 = vst [vmem:[%s336_s18] sm:$0xff] %v767_v60 }
 0x27d   : > { %1148 = shalt.err (!%p1145_p12)
}
 0x27e   : > { %s1149_s17 = scalar_lea.hbm %s1403_s26, 128  ;;  %s1153_s23 = scalar_lea.hbm %s1453_s7, 768 }
 0x27f   : > { %p1150_p1 = scmp.ne.s32.totalorder %s1403_s26, %s1149_s17  ;;  %p1154_p2 = scmp.lt.s32.totalorder %s1403_s26, %s1453_s7 }
 0x280   : > { %p1155_p4 = scmp.lt.s32.totalorder %s1153_s23, %s1149_s17 }
 0x281   : > { %p1151_p3 = pnand %p1150_p1, %p1305_p5 }
 0x282   : > { %p1156_p9 = por %p1155_p4, %p1154_p2 }
 0x283   : > { %p1152_p7 = pneg %p1151_p3 }
 0x285   : > { %p1157_p6 = pnand %p1156_p9, %p1152_p7 }
 0x287   : > { %1160 = shalt.err (!%p1157_p6)
}
 0x288   : > { %982 = dma.vmem_to_hbm [thread:$0]  (%p1305_p5), %s787_s20, 128, %s1403_s26, %s773_s25  }
 0x289   : > { %p1468_p10 = scmp.eq.s32.totalorder %s1286_s9, 5 }
 0x28b   : > { %1186 = dma.done.wait (%p1468_p10), [#allocation10], 128   ;;  %p1469_p13 = pmov %p1468_p10 }
 0x28d   : > { %1188 = vsyncadd (%p1469_p13), [#allocation10], 4294967168 }
 0x28e PF: > { %p1005_p11 = scmp.ge.s32.totalorder %s1207_s30, 2  ;;  %s813_s10 = sand.u32 1, %s1195_s27  }
 0x28f   : > { %p1470_p0 = scmp.ne.s32.totalorder %s1458_s16, 0  ;;  %s814_s12 = scalar_lea.sflag [#allocation5], %s813_s10 }
 0x291   : > { %p996_p8 = pnand %p1005_p11, %p1470_p0 }
 0x293   : > { %p997_p12 = pneg %p996_p8 }
 0x295   : > { %1190 = dma.done.wait (%p997_p12), %s814_s12, 128  }
 0x296   : > { %1192 = vsyncadd (%p997_p12), %s814_s12, 4294967168  ;;  %p22_p5 = scmp.ge.s32.totalorder %s1290_s11, 8   ;;  %s1471_s27 = smov %s1199_s28 }
 0x297   : > { %s1472_s28 = smov %s1203_s29  ;;  %s1473_s29 = smov %s1301_s14 }
 0x298   : > { %s1474_s30 = smov %s1290_s11  ;;  %24 = sbr.rel (!%p22_p5) target bundleno = 6 (0x6), region = 107 }
 0x29d   :  { %819 = vsyncpa [#allocation4], 1 }
 0x29e   :  { %821 = vsyncpa [#allocation4 + $0x1], 1 }
 0x29f   :  { %822 = vsyncpa [#allocation7], 1 }
 0x2a0   :  { %823 = vsyncpa [#allocation5], 1 }
 0x2a1   :  { %825 = vsyncpa [#allocation5 + $0x1], 1 }
 0x2a2   :  { %826 = vsyncpa [#allocation10], 1 }

</bundles_post_ra>
